<compile_context>
chip_gen: v7x
topology: tpu7x:2x2x1
jax: 0.10.0
libtpu: 0.0.40
codegen_flags: <defaults>
</compile_context>

<pallas_src>
from functools import partial

import numpy as np
import jax
import jax.numpy as jnp
from jax.experimental import pallas as pl
from jax.experimental.pallas import tpu as pltpu

EPS = 1e-5  # nn.BatchNorm2d default eps
VMEM_LIMIT = 32 * 1024 * 1024


# ------------------ per-channel batch statistics (layer 0 only) --------------

def _stats_kernel(x_ref, s_ref, q_ref):
    # x_ref: (1, C, HW) block. Accumulate per-channel sum / sum-of-squares into
    # the (C, 1) outputs that stay resident across the (sequential) grid.
    @pl.when(pl.program_id(0) == 0)
    def _():
        s_ref[...] = jnp.zeros_like(s_ref)
        q_ref[...] = jnp.zeros_like(q_ref)

    xf = x_ref[0]                                       # (C, HW) f32
    s_ref[...] += jnp.sum(xf, axis=1, keepdims=True)
    q_ref[...] += jnp.sum(xf * xf, axis=1, keepdims=True)


def batch_stats(x_flat):
    """x_flat: (B, C, HW) f32 -> per-channel (sum, sum_sq), each (C,)."""
    B, C, HW = x_flat.shape
    s, q = pl.pallas_call(
        _stats_kernel,
        out_shape=(jax.ShapeDtypeStruct((C, 1), jnp.float32),
                   jax.ShapeDtypeStruct((C, 1), jnp.float32)),
        grid=(B,),
        in_specs=[pl.BlockSpec((1, C, HW), lambda b: (b, 0, 0))],
        out_specs=(pl.BlockSpec((C, 1), lambda b: (0, 0)),
                   pl.BlockSpec((C, 1), lambda b: (0, 0))),
        compiler_params=pltpu.CompilerParams(
            dimension_semantics=("arbitrary",),
            vmem_limit_bytes=VMEM_LIMIT),
        cost_estimate=pl.CostEstimate(flops=3 * B * C * HW, transcendentals=0,
                                      bytes_accessed=4 * B * C * HW),
    )(x_flat)
    return s[:, 0], q[:, 0]


# --------- fused BN + conv3x3(pad=1) + relu + sign + next-layer stats --------

def _conv_kernel(*refs, K, img_w, first, emit_relu):
    # refs (in order): x (1,C,HW), mean (C,1), rstd (C,1), w (P,K*K*C),
    #                  masks (K*K,HW), [pat_in (1,P,HW)],
    #                  [relu (1,P,HW), ssum (1,P,1), ssq (1,P,1)],
    #                  pat_out (1,P,HW), xpf scratch, slab scratch.
    it = iter(refs)
    x_ref = next(it)
    mean_ref = next(it)
    rstd_ref = next(it)
    w_ref = next(it)
    mask_ref = next(it)
    pin_ref = None if first else next(it)
    relu_ref = ssum_ref = ssq_ref = None
    if emit_relu:
        relu_ref = next(it)
        ssum_ref = next(it)
        ssq_ref = next(it)
    pout_ref = next(it)
    xpf_ref = next(it)
    slab_ref = next(it)

    C = x_ref.shape[1]
    HW = x_ref.shape[2]
    PAD = img_w + 1

    # BatchNorm (affine=False, batch stats), all in VMEM / f32.
    xn = (x_ref[0] - mean_ref[...]) * rstd_ref[...]          # (C, HW)

    # In-kernel zero padding of the flattened row (covers out-of-image rows),
    # then im2col: 9 static lane-shifted slices * per-tap validity masks
    # (the masks kill column-wrap and boundary pixels -> exact zero padding).
    xpf_ref[...] = jnp.zeros_like(xpf_ref)
    xpf_ref[:, PAD:PAD + HW] = xn
    for t in range(K * K):
        dy, dx = divmod(t, K)
        off = PAD + (dy - 1) * img_w + (dx - 1)              # static, >= 0
        slab_ref[t * C:(t + 1) * C, :] = (xpf_ref[:, off:off + HW] *
                                          mask_ref[t:t + 1, :])

    # One lane-dense MXU dot: (P, K*K*C) x (K*K*C, HW) -> (P, HW), f32 acc.
    z = jnp.dot(w_ref[...], slab_ref[...],
                preferred_element_type=jnp.float32)          # (P, HW)

    sgn = (z >= 0.0).astype(jnp.float32)
    if first:
        pout_ref[...] = sgn.reshape(pout_ref.shape)
    else:
        pout_ref[...] = (sgn * pin_ref[0]).reshape(pout_ref.shape)

    if emit_relu:
        relu = jnp.maximum(z, 0.0)
        relu_ref[...] = relu.reshape(relu_ref.shape)
        # Fused partial statistics for the NEXT layer's BatchNorm.
        ssum_ref[...] = jnp.sum(relu, axis=1,
                                keepdims=True).reshape(ssum_ref.shape)
        ssq_ref[...] = jnp.sum(relu * relu, axis=1,
                               keepdims=True).reshape(ssq_ref.shape)


def conv_bn_sign_layer(x, mean, rstd, w_mat, masks, pat_in, emit_relu, img_w):
    """x: (B,C,HW) f32, mean/rstd: (C,1), w_mat: (P,K*K*C), masks: (K*K,HW)."""
    B, C, HW = x.shape
    P, KKC = w_mat.shape
    KK = masks.shape[0]
    K = int(round(KK ** 0.5))
    first = pat_in is None

    in_specs = [
        pl.BlockSpec((1, C, HW), lambda b: (b, 0, 0)),
        pl.BlockSpec((C, 1), lambda b: (0, 0)),
        pl.BlockSpec((C, 1), lambda b: (0, 0)),
        pl.BlockSpec((P, KKC), lambda b: (0, 0)),
        pl.BlockSpec((KK, HW), lambda b: (0, 0)),
    ]
    args = [x, mean, rstd, w_mat, masks]
    if not first:
        in_specs.append(pl.BlockSpec((1, P, HW), lambda b: (b, 0, 0)))
        args.append(pat_in)

    out_shape, out_specs = [], []
    if emit_relu:
        out_shape += [jax.ShapeDtypeStruct((B, P, HW), jnp.float32),
                      jax.ShapeDtypeStruct((B, P, 1), jnp.float32),
                      jax.ShapeDtypeStruct((B, P, 1), jnp.float32)]
        out_specs += [pl.BlockSpec((1, P, HW), lambda b: (b, 0, 0)),
                      pl.BlockSpec((1, P, 1), lambda b: (b, 0, 0)),
                      pl.BlockSpec((1, P, 1), lambda b: (b, 0, 0))]
    out_shape.append(jax.ShapeDtypeStruct((B, P, HW), jnp.float32))
    out_specs.append(pl.BlockSpec((1, P, HW), lambda b: (b, 0, 0)))

    flops = 2 * B * HW * KKC * P
    n_hbm = C + (3 if emit_relu else 1) * P + (0 if first else P)
    bytes_accessed = 4 * B * HW * n_hbm

    outs = pl.pallas_call(
        partial(_conv_kernel, K=K, img_w=img_w, first=first,
                emit_relu=emit_relu),
        out_shape=tuple(out_shape),
        grid=(B,),
        in_specs=in_specs,
        out_specs=tuple(out_specs),
        scratch_shapes=[
            pltpu.VMEM((C, HW + 2 * (img_w + 1)), jnp.float32),  # padded rows
            pltpu.VMEM((KKC, HW), jnp.float32),                  # im2col slab
        ],
        compiler_params=pltpu.CompilerParams(
            dimension_semantics=("parallel",),
            vmem_limit_bytes=VMEM_LIMIT),
        cost_estimate=pl.CostEstimate(flops=flops, transcendentals=0,
                                      bytes_accessed=bytes_accessed),
    )(*args)
    return outs


# ------------------------------ forward wrapper -------------------------------

def sign_pattern_generator(x_nchw, weights_oihw, kernel_size=3, padding=1):
    """weights_oihw: list of n conv weights, each [planes, cur_in, k, k]."""
    assert kernel_size == 3 and padding == 1
    B, C0, H, W = x_nchw.shape
    HW = H * W
    n = len(weights_oihw)
    K, KK = kernel_size, kernel_size * kernel_size

    # Per-tap validity masks (shared by every layer): exact zero padding.
    yy, xx = np.mgrid[0:H, 0:W]
    m = []
    for dy in range(K):
        for dx in range(K):
            ry, rx = dy - 1, dx - 1
            m.append(((yy + ry >= 0) & (yy + ry < H) &
                      (xx + rx >= 0) & (xx + rx < W)).reshape(-1))
    masks = jnp.asarray(np.stack(m).astype(np.float32))          # (KK, HW)

    cur = x_nchw.astype(jnp.float32).reshape(B, C0, HW)          # lane-dense
    npix = B * HW

    # Layer-0 statistics (later layers get theirs fused into the conv kernel).
    s, q = batch_stats(cur)
    mean = s / npix
    # TODO(synk): single-pass E[x^2]-E[x]^2 can cancel if means >> std;
    # switch to a shifted/Welford accumulation for such regimes.
    var = jnp.maximum(q / npix - mean * mean, 0.0)

    pattern = None
    for li, w in enumerate(weights_oihw):
        P, C = w.shape[0], w.shape[1]
        rstd = jax.lax.rsqrt(var + EPS)
        # (P, C, K, K) -> (P, K, K, C) -> (P, K*K*C); row index = tap*C + c,
        # matching the slab layout built in-kernel.
        w_mat = jnp.transpose(w.astype(jnp.float32),
                              (0, 2, 3, 1)).reshape(P, KK * C)
        emit_relu = li < n - 1

        outs = conv_bn_sign_layer(cur, mean.reshape(C, 1), rstd.reshape(C, 1),
                                  w_mat, masks, pattern, emit_relu, W)
        if emit_relu:
            relu, ssum, ssq, pattern = outs
            cur = relu                                           # (B, P, HW)
            s1 = jnp.sum(ssum[:, :, 0], axis=0)                  # (P,)
            q1 = jnp.sum(ssq[:, :, 0], axis=0)
            mean = s1 / npix
            var = jnp.maximum(q1 / npix - mean * mean, 0.0)
        else:
            pattern = outs[0]

    # (B, P, HW) -> (B, P, H, W) is a free reshape (no transpose needed).
    return pattern.reshape(B, -1, H, W) > 0.5


# --------------------------- pure-JAX reference -------------------------------

def _reference(x_nchw, weights):
    x = x_nchw.astype(jnp.float32)
    pat, min_abs = None, None
    for w in weights:
        mean = jnp.mean(x, axis=(0, 2, 3), keepdims=True)
        var = jnp.mean((x - mean) ** 2, axis=(0, 2, 3), keepdims=True)
        xn = (x - mean) * jax.lax.rsqrt(var + EPS)
        z = jax.lax.conv_general_dilated(
            xn, w, window_strides=(1, 1), padding=((1, 1), (1, 1)),
            dimension_numbers=("NCHW", "OIHW", "NCHW"),
            precision=jax.lax.Precision.HIGHEST)
        s = z >= 0
        pat = s if pat is None else jnp.logical_and(pat, s)
        a = jnp.abs(z)
        min_abs = a if min_abs is None else jnp.minimum(min_abs, a)
        x = jnp.maximum(z, 0.0)
    return pat, min_abs


# --------------------------------- main ---------------------------------------

if __name__ == "__main__":
    B, in_planes, H, W = 2, 4, 16, 16
    planes = 8

    key = jax.random.PRNGKey(0)
    kx, k0, k1 = jax.random.split(key, 3)
    x = jax.random.normal(kx, (B, in_planes, H, W), jnp.float32)
    # Deterministic synthetic conv weights (bias=False), PyTorch OIHW shapes.
    w0 = jax.random.normal(k0, (planes, in_planes, 3, 3), jnp.float32) * 0.2
    w1 = jax.random.normal(k1, (planes, planes, 3, 3), jnp.float32) * 0.2
    weights = [w0, w1]

    out = jax.block_until_ready(sign_pattern_generator(x, weights))
    assert out.shape == (B, planes, H, W), out.shape
    assert out.dtype == jnp.bool_, out.dtype

    ref_pat, min_abs = _reference(x, weights)
    # Only require sign agreement where the reference pre-activations are
    # clearly nonzero (accumulation-order / MXU precision can flip near-zero
    # signs); the band is narrow since everything is f32.
    TOL = 3e-2
    agree = (out == ref_pat) | (min_abs < TOL)
    assert bool(jnp.all(agree)), "Pallas sign pattern does not match reference"
    checked_frac = float(jnp.mean((min_abs >= TOL).astype(jnp.float32)))
    assert checked_frac > 0.8, f"tolerance band too wide ({checked_frac:.2f})"

    print("KERNEL_OK")
</pallas_src>

<mosaic_0001>
module attributes {stable_mosaic.version = 11 : i64} {
  func.func @_stats_kernel(%arg0: i32, %arg1: memref<1x4x256xf32, #tpu.memory_space<vmem>>, %arg2: memref<4x1xf32, #tpu.memory_space<vmem>>, %arg3: memref<4x1xf32, #tpu.memory_space<vmem>>) attributes {dimension_semantics = [#tpu.dimension_semantics<arbitrary>], iteration_bounds = array<i64: 2>, scalar_prefetch = 0 : i64, scratch_operands = 0 : i64, tpu.core_type = #tpu.core_type<tc>, window_params = [{transform_indices = @transform_0, window_bounds = array<i64: 1, 4, 256>}, {pipeline_mode = #tpu.pipeline_mode<synchronous>, transform_indices = @transform_1, window_bounds = array<i64: 4, 1>}, {pipeline_mode = #tpu.pipeline_mode<synchronous>, transform_indices = @transform_2, window_bounds = array<i64: 4, 1>}]} {
    %c0_i32 = arith.constant 0 : i32
    %0 = arith.cmpi eq, %arg0, %c0_i32 : i32
    %1 = arith.extui %0 : i1 to i32
    %c0_i32_0 = arith.constant 0 : i32
    %2 = arith.cmpi ne, %1, %c0_i32_0 : i32
    scf.if %2 {
      %cst_12 = arith.constant 0.000000e+00 : f32
      %16 = vector.broadcast %cst_12 : f32 to vector<4x1xf32>
      %c0_13 = arith.constant 0 : index
      %c0_14 = arith.constant 0 : index
      %17 = vector.load %arg2[%c0_13, %c0_14] : memref<4x1xf32, #tpu.memory_space<vmem>>, vector<4x1xf32>
      tpu.vector_store %arg2[%c0_13, %c0_14], %16 {strides = array<i32>} : memref<4x1xf32, #tpu.memory_space<vmem>>, vector<4x1xf32>,
      %cst_15 = arith.constant 0.000000e+00 : f32
      %18 = vector.broadcast %cst_15 : f32 to vector<4x1xf32>
      %c0_16 = arith.constant 0 : index
      %c0_17 = arith.constant 0 : index
      %19 = vector.load %arg3[%c0_16, %c0_17] : memref<4x1xf32, #tpu.memory_space<vmem>>, vector<4x1xf32>
      tpu.vector_store %arg3[%c0_16, %c0_17], %18 {strides = array<i32>} : memref<4x1xf32, #tpu.memory_space<vmem>>, vector<4x1xf32>,
    } else {
    }
    %c0 = arith.constant 0 : index
    %c0_1 = arith.constant 0 : index
    %c0_2 = arith.constant 0 : index
    %3 = vector.load %arg1[%c0, %c0_1, %c0_2] : memref<1x4x256xf32, #tpu.memory_space<vmem>>, vector<1x4x256xf32>
    %4 = vector.shape_cast %3 : vector<1x4x256xf32> to vector<4x256xf32>
    %c0_3 = arith.constant 0 : index
    %c0_4 = arith.constant 0 : index
    %5 = vector.load %arg2[%c0_3, %c0_4] : memref<4x1xf32, #tpu.memory_space<vmem>>, vector<4x1xf32>
    %cst = arith.constant dense<0.000000e+00> : vector<4xf32>
    %6 = vector.multi_reduction <add>, %4, %cst [1] : vector<4x256xf32> to vector<4xf32>
    %7 = vector.shape_cast %6 : vector<4xf32> to vector<4x1xf32>
    %8 = arith.addf %5, %7 : vector<4x1xf32>
    %c0_5 = arith.constant 0 : index
    %c0_6 = arith.constant 0 : index
    %9 = vector.load %arg2[%c0_5, %c0_6] : memref<4x1xf32, #tpu.memory_space<vmem>>, vector<4x1xf32>
    tpu.vector_store %arg2[%c0_5, %c0_6], %8 {strides = array<i32>} : memref<4x1xf32, #tpu.memory_space<vmem>>, vector<4x1xf32>,
    %c0_7 = arith.constant 0 : index
    %c0_8 = arith.constant 0 : index
    %10 = vector.load %arg3[%c0_7, %c0_8] : memref<4x1xf32, #tpu.memory_space<vmem>>, vector<4x1xf32>
    %11 = arith.mulf %4, %4 : vector<4x256xf32>
    %cst_9 = arith.constant dense<0.000000e+00> : vector<4xf32>
    %12 = vector.multi_reduction <add>, %11, %cst_9 [1] : vector<4x256xf32> to vector<4xf32>
    %13 = vector.shape_cast %12 : vector<4xf32> to vector<4x1xf32>
    %14 = arith.addf %10, %13 : vector<4x1xf32>
    %c0_10 = arith.constant 0 : index
    %c0_11 = arith.constant 0 : index
    %15 = vector.load %arg3[%c0_10, %c0_11] : memref<4x1xf32, #tpu.memory_space<vmem>>, vector<4x1xf32>
    tpu.vector_store %arg3[%c0_10, %c0_11], %14 {strides = array<i32>} : memref<4x1xf32, #tpu.memory_space<vmem>>, vector<4x1xf32>,
    return
  }
  func.func @transform_0(%arg0: i32) -> (i32, i32, i32) {
    %c0_i32 = arith.constant 0 : i32
    %c0_i32_0 = arith.constant 0 : i32
    %c0_i32_1 = arith.constant 0 : i32
    return %arg0, %c0_i32, %c0_i32_0 : i32, i32, i32
  }
  func.func @transform_1(%arg0: i32) -> (i32, i32) {
    %c0_i32 = arith.constant 0 : i32
    %c0_i32_0 = arith.constant 0 : i32
    %c0_i32_1 = arith.constant 0 : i32
    return %c0_i32, %c0_i32_0 : i32, i32
  }
  func.func @transform_2(%arg0: i32) -> (i32, i32) {
    %c0_i32 = arith.constant 0 : i32
    %c0_i32_0 = arith.constant 0 : i32
    %c0_i32_1 = arith.constant 0 : i32
    return %c0_i32, %c0_i32_0 : i32, i32
  }
}

</mosaic_0001>

<bundles_post_ra>
// kernel: tpu_custom_call.1
= control target key start
LH: loop header
LB: loop body
LE: loop exit
PB: predicated region body
PF: predicated region fallthrough
CT: control target
= control target key end

     0   :  { %8 = vsyncpa [#allocation3], 0  ;;  %s480_s0 = inlined_call_operand.hbm [shape: f32[2,4,256], index: 0, kind: input, shape index: {}]   ;;  %s481_s1 = inlined_call_operand.vmem [shape: f32[4,1], index: 1, kind: output, shape index: {0}]   ;;  %s482_s2 = inlined_call_operand.vmem [shape: f32[4,1], index: 2, kind: output, shape index: {1}]  }
   0x1   :  { %10 = vsyncpa [#allocation3 + $0x1], 0  ;;  %s359_s9 = smov 0   ;;  %s361_s10 = smov 0  }
   0x2   :  { %s363_s11 = smov 0   ;;  %s365_s12 = smov 0  }
   0x3 LB: > { %s223_s13 = sadd.s32 4294967295, %s340_s12   ;;  %s379_s14 = sadd.s32 1, %s340_s12   ;;  %s340_s12 = sphi %s365_s12, %s490_s12   ;;  %s336_s11 = sphi %s363_s11, %s489_s11   ;;  %s332_s10 = sphi %s361_s10, %s488_s10   ;;  %s328_s9 = sphi %s359_s9, %s487_s9  }
   0x4   : > { %s20_s15 = ssub.s32 %s340_s12, %s379_s14  ;;  %s23_s16 = sadd.s32 1, %s336_s11 }
   0x5   : > { %p21_p0 = scmp.eq.s32.totalorder %s20_s15, 0  ;;  %p30_p1 = scmp.ne.s32.totalorder %s336_s11, %s332_s10 }
   0x6   : > { %p31_p2 = scmp.eq.s32.totalorder %s340_s12, 0  ;;  %p36_p3 = scmp.ne.s32.totalorder %s332_s10, %s328_s9 }
   0x7   : > { %s389_s17 = scalar_select %p21_p0, %s336_s11, %s23_s16  }
   0x8   : > { %p32_p4 = por %p31_p2, %p30_p1  ;;  %p37_p5 = scmp.eq.s32.totalorder %s223_s13, 0 }
   0x9   : > { %p241_p6 = scmp.lt.s32.totalorder %s340_s12, 2  ;;  %s102_s19 = sand.u32 1, %s336_s11  }
   0xa   : > { %p394_p7 = por %p37_p5, %p36_p3  ;;  %s226_s20 = sshll.u32 %s102_s19, 3 }
   0xb   : > { %s234_s21 = sshll.u32 %s340_s12, 7  ;;  %s106_s25 = scalar_lea.vmem [#allocation2], %s226_s20 }
   0xc   : > { %s403_s24 = scalar_lea.hbm %s480_s0, %s234_s21  ;;  %s114_s26 = sshll.u32 %s106_s25, 4  ;;  %s405_s26 = int_to_ptr.vmem [resolvable:$true] %s114_s26 }
   0xd   : > { %p407_p8 = pnand %p241_p6, %p32_p4  ;;  %s103_s28 = scalar_lea.sflag [#allocation3], %s102_s19 }
   0xe   : > { %s276_s29 = scalar_lea.hbm %s403_s24, 128  ;;  %s281_s4 = scalar_lea.hbm %s480_s0, 256 }
   0xf   : > { %p277_p11 = scmp.ne.s32.totalorder %s403_s24, %s276_s29  ;;  %p278_p12 = pneg %p407_p8 }
  0x10   : > { %p282_p1 = scmp.lt.u32.totalorder %s403_s24, %s480_s0  ;;  %p283_p2 = scmp.lt.u32.totalorder %s281_s4, %s276_s29 }
  0x11   : > { %p279_p13 = pnand %p278_p12, %p277_p11  ;;  %p285_p4 = scmp.lt.u32.totalorder %s276_s29, %s403_s24 }
  0x12   : > { %p284_p3 = por %p283_p2, %p282_p1 }
  0x13   : > { %p280_p0 = pneg %p279_p13 }
  0x14   : > { %p286_p5 = por %p285_p4, %p284_p3 }
  0x16   : > { %p287_p6 = pnand %p286_p5, %p280_p0 }
  0x18   : > { %290 = shalt.err (!%p287_p6)
}
  0x19   : > { %s291_s7 = scalar_lea.vmem %s405_s26, 128  ;;  %s342_s8 = smov [#allocation2]  }
  0x1a   : > { %p292_p11 = scmp.ne.s32.totalorder %s405_s26, %s291_s7  ;;  %s296_s9 = sshll.u32 %s342_s8, 4  ;;  %s297_s9 = int_to_ptr.vmem [resolvable:$false] %s296_s9 }
  0x1b   : > { %s298_s15 = scalar_lea.vmem %s297_s9, 256  ;;  %p299_p10 = scmp.lt.s32.totalorder %s405_s26, %s297_s9 }
  0x1c   : > { %p294_p13 = pnand %p292_p11, %p278_p12  ;;  %p300_p1 = scmp.lt.s32.totalorder %s298_s15, %s291_s7 }
  0x1e   : > { %p295_p9 = pneg %p294_p13  ;;  %p301_p2 = por %p300_p1, %p299_p10 }
  0x20   : > { %p302_p3 = pnand %p301_p2, %p295_p9 }
  0x22   : > { %305 = shalt.err (!%p302_p3)
}
  0x23   : > { %240 = dma.hbm_to_vmem [thread:$0]  (!%p407_p8), %s403_s24, 128, %s405_s26, %s103_s28  }
  0x24   : > { %p485_p0 = scmp.lt.s32.totalorder %s340_s12, 3  ;;  %p486_p4 = scmp.ge.s32.totalorder %s340_s12, 1 }
  0x26   : > { %p120_p12 = pnand %p486_p4, %p485_p0 }
  0x27   : > { %s125_s16 = sand.u32 (!%p120_p12), 1, %s332_s10  }
  0x28   : > { %123 = sbr.rel (%p120_p12) target bundleno = 212 (0xd4), region = 24  ;;  %s230_s19 = sshll.u32 (!%p120_p12), %s125_s16, 3 }
  0x29   : > { %s126_s20 = scalar_lea.sflag (!%p120_p12), [#allocation3], %s125_s16  ;;  %s129_s21 = scalar_lea.vmem (!%p120_p12), [#allocation2], %s230_s19 }
  0x2f   : > { %323 = dma.done.wait (%p394_p7), %s126_s20, 128  }
  0x30   : > { %325 = vsyncadd (%p394_p7), %s126_s20, 4294967168  ;;  %p231_p9 = scmp.ne.s32.totalorder %s223_s13, 0 }
  0x31   : > { %vm149_vm0 = vcmask (!%p231_p9), 3072   ;;  %v343_v0 = vmov (!%p231_p9), 0.0  }
  0x32   : > { %148 = sbr.rel (%p231_p9) target bundleno = 57 (0x39), region = 32  ;;  %150 = vst.msk [vmem:[%s481_s1] sm:$0xf] (!%p231_p9), %vm149_vm0, %v343_v0  ;;  %151 = vst.msk [vmem:[%s482_s2] sm:$0xf] (!%p231_p9), %vm149_vm0, %v343_v0 }
  0x39 PF: > { %v152_v1 = vld [vmem:[%s129_s21] sm:$0xff]  ;;  %vm157_vm1 = vcmask 1043456   ;;  %vm164_vm2 = vcmask 3072  }
  0x3a   : > { %v155_v2 = vcombine.high %v152_v1, %v152_v1  ;;  %v158_v3 = vsel %vm157_vm1, %v152_v1, 0.0  ;;  %v167_v4 = vmul.f32 %v152_v1, %v152_v1  ;;  %v153_v11 = vld [vmem:[%s481_s1] sm:$0xf] }
  0x3b   : > { %v166_v14 = vld [vmem:[%s482_s2] sm:$0xf] }
  0x3c   : > { %v159_v5 = vsel %vm157_vm1, %v155_v2, 0.0  ;;  %v169_v6 = vcombine.high %v167_v4, %v167_v4  ;;  %v171_v7 = vsel %vm157_vm1, %v167_v4, 0.0 }
  0x3d   : > { %v160_v8 = vadd.f32 %v159_v5, %v158_v3 }
  0x3e   : > { %v172_v9 = vsel %vm157_vm1, %v169_v6, 0.0 }
  0x3f   : > { %161 = vadd.xlane.f32.xlu0 %v160_v8  ;;  %v173_v10 = vadd.f32 %v172_v9, %v171_v7 }
  0x43   : > { %174 = vadd.xlane.f32.xlu0 %v173_v10 }
  0xcc   : > { %v162_v12 = vpop.xlane.xlu0 %161 }
  0xcd   : > { %v163_v13 = vadd.f32 %v162_v12, %v153_v11 }
  0xcf   : > { %165 = vst.msk [vmem:[%s481_s1] sm:$0xf] %vm164_vm2, %v163_v13 }
  0xd0   : > { %v175_v15 = vpop.xlane.xlu0 %174 }
  0xd1   : > { %v176_v16 = vadd.f32 %v175_v15, %v166_v14 }
  0xd3   : > { %177 = vst.msk [vmem:[%s482_s2] sm:$0xf] %vm164_vm2, %v176_v16 }
  0xd4 PF: > { %p13_p7 = scmp.ge.s32.totalorder %s379_s14, 4   ;;  %s487_s9 = smov %s332_s10 }
  0xd5   : > { %s488_s10 = smov %s336_s11  ;;  %s489_s11 = smov %s389_s17 }
  0xd6   : > { %s490_s12 = smov %s379_s14  ;;  %15 = sbr.rel (!%p13_p7) target bundleno = 3 (0x3), region = 72 }
  0xdd   :  { %195 = vsyncpa [#allocation3], 1 }
  0xde   :  { %197 = vsyncpa [#allocation3 + $0x1], 1 }

</bundles_post_ra>
